<compile_context>
chip_gen: v7x
topology: tpu7x:2x2x1
jax: 0.10.0
libtpu: 0.0.40
codegen_flags: <defaults>
</compile_context>

<pallas_src>
import math

import jax
import jax.numpy as jnp
from jax.experimental import pallas as pl
from jax.experimental.pallas import tpu as pltpu


# ---------------------------------------------------------------------------
# Parameter construction (mirrors AutoEncoder.__init__ / init_weights)
# ---------------------------------------------------------------------------
def compute_dimensions(input_dimension, feature_count, layer_dims=None):
    if layer_dims is None:
        layer_count = max(1, math.ceil(math.log(input_dimension, 16)) - 1)
        reduction_ratio = (feature_count / input_dimension) ** (1.0 / layer_count)
        dimensions = [input_dimension]
        for _ in range(1, layer_count):
            next_dim = max(feature_count, int(dimensions[-1] * reduction_ratio))
            dimensions.append(next_dim)
        dimensions.append(feature_count)
    else:
        dimensions = [input_dimension] + list(layer_dims)
    return dimensions


def init_params(key, dims):
    """Xavier-uniform weights, zero biases, for encoder followed by decoder."""
    rev = list(reversed(dims))
    layer_specs = []
    # encoder: Linear + Tanh between all layers except after the last Linear
    for i in range(len(dims) - 1):
        layer_specs.append((dims[i], dims[i + 1], i != len(dims) - 2))
    # decoder: same pattern on reversed dimensions
    for i in range(len(rev) - 1):
        layer_specs.append((rev[i], rev[i + 1], i != len(rev) - 2))

    params = []
    apply_tanh = []
    for fan_in, fan_out, tanh_flag in layer_specs:
        key, wk = jax.random.split(key)
        bound = math.sqrt(6.0 / (fan_in + fan_out))
        # stored directly as (in, out) == transpose of torch's (out, in) weight
        w = jax.random.uniform(wk, (fan_in, fan_out), jnp.float32, -bound, bound)
        b = jnp.zeros((fan_out,), jnp.float32)
        params.append((w, b))
        apply_tanh.append(tanh_flag)
    return params, tuple(apply_tanh)


def _fuse_linear_chains(params, apply_tanh):
    """Collapse runs of Linear layers with no activation between them into one Linear.

    For this module that fuses encoder-last (no tanh) with decoder-first:
    h@W1@W2 + (b1@W2 + b2); mathematically identical (rank of the fused weight is
    bounded by the bottleneck), only fp rounding differs."""
    fused, fused_tanh = [], []
    for (w, b), t in zip(params, apply_tanh):
        if fused and not fused_tanh[-1]:
            w_prev, b_prev = fused[-1]
            fused[-1] = (w_prev @ w, b_prev @ w + b)
            fused_tanh[-1] = t
        else:
            fused.append((w, b))
            fused_tanh.append(t)
    return fused, tuple(fused_tanh)


# ---------------------------------------------------------------------------
# Pallas kernel: (fused) encoder -> decoder -> lane-dense segmented softmax
# ---------------------------------------------------------------------------
def _make_autoencoder_kernel(n_layers, apply_tanh, n_seg):
    def kernel(*refs):
        x_ref = refs[0]
        wb_refs = refs[1:1 + 2 * n_layers]      # alternating (w, b) refs, VMEM-resident
        s_ref = refs[1 + 2 * n_layers]          # [D, n_seg] one-hot segment matrix
        st_ref = refs[2 + 2 * n_layers]         # [n_seg, D] = S.T
        out_ref = refs[-1]

        h = x_ref[...]
        for i in range(n_layers):
            w = wb_refs[2 * i][...]
            b = wb_refs[2 * i + 1][...]         # (1, out) -> broadcasts over batch rows
            h = jnp.dot(h.astype(w.dtype), w, preferred_element_type=jnp.float32) + b
            if apply_tanh[i]:
                h = jnp.tanh(h)                 # EUP

        # ---- segmented softmax, full-width / lane-dense (no slices, no concat) ----
        S = s_ref[...]                          # [D, n_seg]
        ST = st_ref[...]                        # [n_seg, D]
        neg = jnp.float32(-1e30)

        # Per-segment max broadcast back to full width. Segments are disjoint and
        # cover all D columns, so exactly one term is nonzero per column.
        col_max = jnp.zeros_like(h)
        for s in range(n_seg):                  # n_seg is tiny & static
            row = ST[s:s + 1, :]                # [1, D] static slice of a value
            m_s = jnp.max(jnp.where(row > 0.5, h, neg), axis=1, keepdims=True)  # [TB,1] (XLU)
            col_max = col_max + m_s * row       # VPU multiply-add

        e = jnp.exp(h - col_max)                                               # EUP
        seg_sum = jnp.dot(e, S, preferred_element_type=jnp.float32)            # [TB, n_seg] (MXU)
        denom = jnp.dot(seg_sum, ST, preferred_element_type=jnp.float32)       # [TB, D]     (MXU)

        r = pl.reciprocal(denom, approx=True)   # EUP slot, otherwise idle here
        r = r * (2.0 - denom * r)               # one Newton step -> ~f32 accuracy
        out_ref[...] = (e * r).astype(out_ref.dtype)   # single full-width store

    return kernel


def _round_up(n, m):
    return ((n + m - 1) // m) * m


def autoencoder_forward(x, params, apply_tanh, feature_value_indices, *,
                        compute_dtype=jnp.float32):
    """x: [B, D] float32. Returns [B, D] float32 (per-feature-range softmax of decoder output)."""
    B, D = x.shape
    seg_bounds = tuple((int(r.start), int(r.stop)) for r in feature_value_indices)
    assert sum(stop - start for start, stop in seg_bounds) == D
    n_seg = len(seg_bounds)

    # Fuse the activation-free bottleneck pair.
    params, apply_tanh = _fuse_linear_chains(params, apply_tanh)
    n_layers = len(params)

    # One-hot segment matrices, built once wrapper-side.
    S = jnp.zeros((D, n_seg), jnp.float32)
    for s_idx, (start, stop) in enumerate(seg_bounds):
        S = S.at[start:stop, s_idx].set(1.0)
    ST = jnp.transpose(S)

    # Batch tiling: TB rows per grid step (double-buffered); weights stay resident.
    # bf16 weights/activations (compute_dtype=jnp.bfloat16) are recommended on v6e/v7x at a
    # relaxed tolerance; f32 is kept as the default for the tight correctness check and v5e.
    if B <= 1024:
        TB = _round_up(max(B, 8), 8)
    else:
        TB = 1024                               # multiple of 128: fills v5e's 4x128 MXU rows
    Bp = _round_up(B, TB)
    if Bp != B:
        x = jnp.pad(x, ((0, Bp - B), (0, 0)))   # padded rows are computed then dropped below

    inputs = [x]
    in_specs = [pl.BlockSpec((TB, D), lambda i: (i, 0))]
    for w, b in params:
        w = w.astype(compute_dtype)
        b2 = b.reshape(1, -1).astype(jnp.float32)
        inputs += [w, b2]
        in_specs += [pl.BlockSpec(w.shape, lambda i: (0, 0)),     # constant index_map:
                     pl.BlockSpec(b2.shape, lambda i: (0, 0))]    #   VMEM-resident across steps
    inputs += [S, ST]
    in_specs += [pl.BlockSpec(S.shape, lambda i: (0, 0)),
                 pl.BlockSpec(ST.shape, lambda i: (0, 0))]

    kernel = _make_autoencoder_kernel(n_layers, apply_tanh, n_seg)

    # Note: if B grows large enough to become HBM/store-bound, present I/O as a 128-lane slab
    # (reshape (B, 32) <-> (B/4, 128) wrapper-side) to avoid masked stores on the 32-wide output.
    y = pl.pallas_call(
        kernel,
        out_shape=jax.ShapeDtypeStruct((Bp, D), jnp.float32),
        grid=(Bp // TB,),
        in_specs=in_specs,
        out_specs=pl.BlockSpec((TB, D), lambda i: (i, 0)),
        compiler_params=pltpu.CompilerParams(
            dimension_semantics=("parallel",),          # shard batch tiles across TCs (v7x)
            vmem_limit_bytes=32 * 1024 * 1024),
    )(*inputs)

    return y[:B] if Bp != B else y


# ---------------------------------------------------------------------------
# Pure-JAX reference (unfused params, exact divide) for correctness check
# ---------------------------------------------------------------------------
def reference_forward(x, params, apply_tanh, feature_value_indices):
    h = x
    for i, (w, b) in enumerate(params):
        h = h @ w + b
        if apply_tanh[i]:
            h = jnp.tanh(h)
    outs = [jax.nn.softmax(h[:, r.start:r.stop], axis=1) for r in feature_value_indices]
    return jnp.concatenate(outs, axis=1)


if __name__ == "__main__":
    # Small, deterministic configuration consistent with the module:
    # 4 original tabular features, one-hot encoded into 32 columns total.
    input_dimension = 32
    feature_count = 4
    layer_dims = [16, 8]                       # user-specified hidden dims (bottleneck = 8)
    dims = compute_dimensions(input_dimension, feature_count, layer_dims)  # [32, 16, 8]

    key = jax.random.PRNGKey(0)
    params, apply_tanh = init_params(key, dims)

    # feature_value_indices: one column range per original feature (sizes 10, 8, 8, 6)
    feature_value_indices = [range(0, 10), range(10, 18), range(18, 26), range(26, 32)]

    x = jax.random.normal(jax.random.PRNGKey(1), (8, input_dimension), jnp.float32)

    y = autoencoder_forward(x, params, apply_tanh, feature_value_indices)
    jax.block_until_ready(y)

    y_ref = reference_forward(x, params, apply_tanh, feature_value_indices)
    max_err = float(jnp.max(jnp.abs(y - y_ref)))
    assert y.shape == (8, input_dimension)
    assert jnp.allclose(y, y_ref, atol=1e-4, rtol=1e-4), f"max abs err {max_err}"

    print("KERNEL_OK")
</pallas_src>

<mosaic_0001>
module attributes {stable_mosaic.version = 11 : i64} {
  func.func @kernel(%arg0: i32, %arg1: memref<8x32xf32, #tpu.memory_space<vmem>>, %arg2: memref<32x16xf32, #tpu.memory_space<vmem>>, %arg3: memref<1x16xf32, #tpu.memory_space<vmem>>, %arg4: memref<16x16xf32, #tpu.memory_space<vmem>>, %arg5: memref<1x16xf32, #tpu.memory_space<vmem>>, %arg6: memref<16x32xf32, #tpu.memory_space<vmem>>, %arg7: memref<1x32xf32, #tpu.memory_space<vmem>>, %arg8: memref<32x4xf32, #tpu.memory_space<vmem>>, %arg9: memref<4x32xf32, #tpu.memory_space<vmem>>, %arg10: memref<8x32xf32, #tpu.memory_space<vmem>>) attributes {dimension_semantics = [#tpu.dimension_semantics<parallel>], iteration_bounds = array<i64: 1>, scalar_prefetch = 0 : i64, scratch_operands = 0 : i64, tpu.core_type = #tpu.core_type<tc>, window_params = [{transform_indices = @transform_0, window_bounds = array<i64: 8, 32>}, {pipeline_mode = #tpu.pipeline_mode<synchronous>, transform_indices = @transform_1, window_bounds = array<i64: 32, 16>}, {pipeline_mode = #tpu.pipeline_mode<synchronous>, transform_indices = @transform_2, window_bounds = array<i64: 1, 16>}, {pipeline_mode = #tpu.pipeline_mode<synchronous>, transform_indices = @transform_3, window_bounds = array<i64: 16, 16>}, {pipeline_mode = #tpu.pipeline_mode<synchronous>, transform_indices = @transform_4, window_bounds = array<i64: 1, 16>}, {pipeline_mode = #tpu.pipeline_mode<synchronous>, transform_indices = @transform_5, window_bounds = array<i64: 16, 32>}, {pipeline_mode = #tpu.pipeline_mode<synchronous>, transform_indices = @transform_6, window_bounds = array<i64: 1, 32>}, {pipeline_mode = #tpu.pipeline_mode<synchronous>, transform_indices = @transform_7, window_bounds = array<i64: 32, 4>}, {pipeline_mode = #tpu.pipeline_mode<synchronous>, transform_indices = @transform_8, window_bounds = array<i64: 4, 32>}, {transform_indices = @transform_9, window_bounds = array<i64: 8, 32>}]} {
    %c0 = arith.constant 0 : index
    %c0_0 = arith.constant 0 : index
    %0 = vector.load %arg1[%c0, %c0_0] : memref<8x32xf32, #tpu.memory_space<vmem>>, vector<8x32xf32>
    %c0_1 = arith.constant 0 : index
    %c0_2 = arith.constant 0 : index
    %1 = vector.load %arg2[%c0_1, %c0_2] : memref<32x16xf32, #tpu.memory_space<vmem>>, vector<32x16xf32>
    %c0_3 = arith.constant 0 : index
    %c0_4 = arith.constant 0 : index
    %2 = vector.load %arg3[%c0_3, %c0_4] : memref<1x16xf32, #tpu.memory_space<vmem>>, vector<1x16xf32>
    %cst = arith.constant dense<0.000000e+00> : vector<8x16xf32>
    %3 = tpu.matmul %0, %1, %cst {dimension_numbers = #tpu.dot_dimension_numbers<[1], [0], [0], [1], [0, 0, 1, 1], [], []>} : vector<8x32xf32>, vector<32x16xf32>, vector<8x16xf32> -> vector<8x16xf32>
    %4 = vector.broadcast %2 : vector<1x16xf32> to vector<8x16xf32>
    %5 = arith.addf %3, %4 : vector<8x16xf32>
    %6 = math.tanh %5 : vector<8x16xf32>
    %c0_5 = arith.constant 0 : index
    %c0_6 = arith.constant 0 : index
    %7 = vector.load %arg4[%c0_5, %c0_6] : memref<16x16xf32, #tpu.memory_space<vmem>>, vector<16x16xf32>
    %c0_7 = arith.constant 0 : index
    %c0_8 = arith.constant 0 : index
    %8 = vector.load %arg5[%c0_7, %c0_8] : memref<1x16xf32, #tpu.memory_space<vmem>>, vector<1x16xf32>
    %cst_9 = arith.constant dense<0.000000e+00> : vector<8x16xf32>
    %9 = tpu.matmul %6, %7, %cst_9 {dimension_numbers = #tpu.dot_dimension_numbers<[1], [0], [0], [1], [0, 0, 1, 1], [], []>} : vector<8x16xf32>, vector<16x16xf32>, vector<8x16xf32> -> vector<8x16xf32>
    %10 = vector.broadcast %8 : vector<1x16xf32> to vector<8x16xf32>
    %11 = arith.addf %9, %10 : vector<8x16xf32>
    %12 = math.tanh %11 : vector<8x16xf32>
    %c0_10 = arith.constant 0 : index
    %c0_11 = arith.constant 0 : index
    %13 = vector.load %arg6[%c0_10, %c0_11] : memref<16x32xf32, #tpu.memory_space<vmem>>, vector<16x32xf32>
    %c0_12 = arith.constant 0 : index
    %c0_13 = arith.constant 0 : index
    %14 = vector.load %arg7[%c0_12, %c0_13] : memref<1x32xf32, #tpu.memory_space<vmem>>, vector<1x32xf32>
    %cst_14 = arith.constant dense<0.000000e+00> : vector<8x32xf32>
    %15 = tpu.matmul %12, %13, %cst_14 {dimension_numbers = #tpu.dot_dimension_numbers<[1], [0], [0], [1], [0, 0, 1, 1], [], []>} : vector<8x16xf32>, vector<16x32xf32>, vector<8x32xf32> -> vector<8x32xf32>
    %16 = vector.broadcast %14 : vector<1x32xf32> to vector<8x32xf32>
    %17 = arith.addf %15, %16 : vector<8x32xf32>
    %c0_15 = arith.constant 0 : index
    %c0_16 = arith.constant 0 : index
    %18 = vector.load %arg8[%c0_15, %c0_16] : memref<32x4xf32, #tpu.memory_space<vmem>>, vector<32x4xf32>
    %c0_17 = arith.constant 0 : index
    %c0_18 = arith.constant 0 : index
    %19 = vector.load %arg9[%c0_17, %c0_18] : memref<4x32xf32, #tpu.memory_space<vmem>>, vector<4x32xf32>
    %cst_19 = arith.constant 0.000000e+00 : f32
    %20 = vector.broadcast %cst_19 : f32 to vector<8x32xf32>
    %21 = vector.extract_strided_slice %19 {offsets = [0, 0], sizes = [1, 32], strides = [1, 1]} : vector<4x32xf32> to vector<1x32xf32>
    %cst_20 = arith.constant 5.000000e-01 : f32
    %22 = vector.broadcast %cst_20 : f32 to vector<1x32xf32>
    %23 = arith.cmpf ogt, %21, %22 : vector<1x32xf32>
    %cst_21 = arith.constant -1.000000e+30 : f32
    %24 = vector.shape_cast %23 : vector<1x32xi1> to vector<1x32xi1>
    %25 = vector.broadcast %24 : vector<1x32xi1> to vector<8x32xi1>
    %26 = vector.broadcast %cst_21 : f32 to vector<8x32xf32>
    %27 = arith.select %25, %17, %26 : vector<8x32xi1>, vector<8x32xf32>
    %cst_22 = arith.constant dense<0xFF800000> : vector<8xf32>
    %28 = vector.multi_reduction <maximumf>, %27, %cst_22 [1] : vector<8x32xf32> to vector<8xf32>
    %29 = vector.shape_cast %28 : vector<8xf32> to vector<8x1xf32>
    %30 = vector.broadcast %29 : vector<8x1xf32> to vector<8x32xf32>
    %31 = vector.broadcast %21 : vector<1x32xf32> to vector<8x32xf32>
    %32 = arith.mulf %30, %31 : vector<8x32xf32>
    %33 = arith.addf %20, %32 : vector<8x32xf32>
    %34 = vector.extract_strided_slice %19 {offsets = [1, 0], sizes = [1, 32], strides = [1, 1]} : vector<4x32xf32> to vector<1x32xf32>
    %cst_23 = arith.constant 5.000000e-01 : f32
    %35 = vector.broadcast %cst_23 : f32 to vector<1x32xf32>
    %36 = arith.cmpf ogt, %34, %35 : vector<1x32xf32>
    %cst_24 = arith.constant -1.000000e+30 : f32
    %37 = vector.shape_cast %36 : vector<1x32xi1> to vector<1x32xi1>
    %38 = vector.broadcast %37 : vector<1x32xi1> to vector<8x32xi1>
    %39 = vector.broadcast %cst_24 : f32 to vector<8x32xf32>
    %40 = arith.select %38, %17, %39 : vector<8x32xi1>, vector<8x32xf32>
    %cst_25 = arith.constant dense<0xFF800000> : vector<8xf32>
    %41 = vector.multi_reduction <maximumf>, %40, %cst_25 [1] : vector<8x32xf32> to vector<8xf32>
    %42 = vector.shape_cast %41 : vector<8xf32> to vector<8x1xf32>
    %43 = vector.broadcast %42 : vector<8x1xf32> to vector<8x32xf32>
    %44 = vector.broadcast %34 : vector<1x32xf32> to vector<8x32xf32>
    %45 = arith.mulf %43, %44 : vector<8x32xf32>
    %46 = arith.addf %33, %45 : vector<8x32xf32>
    %47 = vector.extract_strided_slice %19 {offsets = [2, 0], sizes = [1, 32], strides = [1, 1]} : vector<4x32xf32> to vector<1x32xf32>
    %cst_26 = arith.constant 5.000000e-01 : f32
    %48 = vector.broadcast %cst_26 : f32 to vector<1x32xf32>
    %49 = arith.cmpf ogt, %47, %48 : vector<1x32xf32>
    %cst_27 = arith.constant -1.000000e+30 : f32
    %50 = vector.shape_cast %49 : vector<1x32xi1> to vector<1x32xi1>
    %51 = vector.broadcast %50 : vector<1x32xi1> to vector<8x32xi1>
    %52 = vector.broadcast %cst_27 : f32 to vector<8x32xf32>
    %53 = arith.select %51, %17, %52 : vector<8x32xi1>, vector<8x32xf32>
    %cst_28 = arith.constant dense<0xFF800000> : vector<8xf32>
    %54 = vector.multi_reduction <maximumf>, %53, %cst_28 [1] : vector<8x32xf32> to vector<8xf32>
    %55 = vector.shape_cast %54 : vector<8xf32> to vector<8x1xf32>
    %56 = vector.broadcast %55 : vector<8x1xf32> to vector<8x32xf32>
    %57 = vector.broadcast %47 : vector<1x32xf32> to vector<8x32xf32>
    %58 = arith.mulf %56, %57 : vector<8x32xf32>
    %59 = arith.addf %46, %58 : vector<8x32xf32>
    %60 = vector.extract_strided_slice %19 {offsets = [3, 0], sizes = [1, 32], strides = [1, 1]} : vector<4x32xf32> to vector<1x32xf32>
    %cst_29 = arith.constant 5.000000e-01 : f32
    %61 = vector.broadcast %cst_29 : f32 to vector<1x32xf32>
    %62 = arith.cmpf ogt, %60, %61 : vector<1x32xf32>
    %cst_30 = arith.constant -1.000000e+30 : f32
    %63 = vector.shape_cast %62 : vector<1x32xi1> to vector<1x32xi1>
    %64 = vector.broadcast %63 : vector<1x32xi1> to vector<8x32xi1>
    %65 = vector.broadcast %cst_30 : f32 to vector<8x32xf32>
    %66 = arith.select %64, %17, %65 : vector<8x32xi1>, vector<8x32xf32>
    %cst_31 = arith.constant dense<0xFF800000> : vector<8xf32>
    %67 = vector.multi_reduction <maximumf>, %66, %cst_31 [1] : vector<8x32xf32> to vector<8xf32>
    %68 = vector.shape_cast %67 : vector<8xf32> to vector<8x1xf32>
    %69 = vector.broadcast %68 : vector<8x1xf32> to vector<8x32xf32>
    %70 = vector.broadcast %60 : vector<1x32xf32> to vector<8x32xf32>
    %71 = arith.mulf %69, %70 : vector<8x32xf32>
    %72 = arith.addf %59, %71 : vector<8x32xf32>
    %73 = arith.subf %17, %72 : vector<8x32xf32>
    %74 = math.exp %73 : vector<8x32xf32>
    %cst_32 = arith.constant dense<0.000000e+00> : vector<8x4xf32>
    %75 = tpu.matmul %74, %18, %cst_32 {dimension_numbers = #tpu.dot_dimension_numbers<[1], [0], [0], [1], [0, 0, 1, 1], [], []>} : vector<8x32xf32>, vector<32x4xf32>, vector<8x4xf32> -> vector<8x4xf32>
    %cst_33 = arith.constant dense<0.000000e+00> : vector<8x32xf32>
    %76 = tpu.matmul %75, %19, %cst_33 {dimension_numbers = #tpu.dot_dimension_numbers<[1], [0], [0], [1], [0, 0, 1, 1], [], []>} : vector<8x4xf32>, vector<4x32xf32>, vector<8x32xf32> -> vector<8x32xf32>
    %77 = tpu.reciprocal %76 {approx = true} : vector<8x32xf32> -> vector<8x32xf32>
    %78 = arith.mulf %76, %77 : vector<8x32xf32>
    %cst_34 = arith.constant 2.000000e+00 : f32
    %79 = vector.broadcast %cst_34 : f32 to vector<8x32xf32>
    %80 = arith.subf %79, %78 : vector<8x32xf32>
    %81 = arith.mulf %77, %80 : vector<8x32xf32>
    %82 = arith.mulf %74, %81 : vector<8x32xf32>
    %c0_35 = arith.constant 0 : index
    %c0_36 = arith.constant 0 : index
    %83 = vector.load %arg10[%c0_35, %c0_36] : memref<8x32xf32, #tpu.memory_space<vmem>>, vector<8x32xf32>
    tpu.vector_store %arg10[%c0_35, %c0_36], %82 {strides = array<i32>} : memref<8x32xf32, #tpu.memory_space<vmem>>, vector<8x32xf32>,
    return
  }
  func.func @transform_0(%arg0: i32) -> (i32, i32) {
    %c0_i32 = arith.constant 0 : i32
    %c0_i32_0 = arith.constant 0 : i32
    return %arg0, %c0_i32 : i32, i32
  }
  func.func @transform_1(%arg0: i32) -> (i32, i32) {
    %c0_i32 = arith.constant 0 : i32
    %c0_i32_0 = arith.constant 0 : i32
    %c0_i32_1 = arith.constant 0 : i32
    return %c0_i32, %c0_i32_0 : i32, i32
  }
  func.func @transform_2(%arg0: i32) -> (i32, i32) {
    %c0_i32 = arith.constant 0 : i32
    %c0_i32_0 = arith.constant 0 : i32
    %c0_i32_1 = arith.constant 0 : i32
    return %c0_i32, %c0_i32_0 : i32, i32
  }
  func.func @transform_3(%arg0: i32) -> (i32, i32) {
    %c0_i32 = arith.constant 0 : i32
    %c0_i32_0 = arith.constant 0 : i32
    %c0_i32_1 = arith.constant 0 : i32
    return %c0_i32, %c0_i32_0 : i32, i32
  }
  func.func @transform_4(%arg0: i32) -> (i32, i32) {
    %c0_i32 = arith.constant 0 : i32
    %c0_i32_0 = arith.constant 0 : i32
    %c0_i32_1 = arith.constant 0 : i32
    return %c0_i32, %c0_i32_0 : i32, i32
  }
  func.func @transform_5(%arg0: i32) -> (i32, i32) {
    %c0_i32 = arith.constant 0 : i32
    %c0_i32_0 = arith.constant 0 : i32
    %c0_i32_1 = arith.constant 0 : i32
    return %c0_i32, %c0_i32_0 : i32, i32
  }
  func.func @transform_6(%arg0: i32) -> (i32, i32) {
    %c0_i32 = arith.constant 0 : i32
    %c0_i32_0 = arith.constant 0 : i32
    %c0_i32_1 = arith.constant 0 : i32
    return %c0_i32, %c0_i32_0 : i32, i32
  }
  func.func @transform_7(%arg0: i32) -> (i32, i32) {
    %c0_i32 = arith.constant 0 : i32
    %c0_i32_0 = arith.constant 0 : i32
    %c0_i32_1 = arith.constant 0 : i32
    return %c0_i32, %c0_i32_0 : i32, i32
  }
  func.func @transform_8(%arg0: i32) -> (i32, i32) {
    %c0_i32 = arith.constant 0 : i32
    %c0_i32_0 = arith.constant 0 : i32
    %c0_i32_1 = arith.constant 0 : i32
    return %c0_i32, %c0_i32_0 : i32, i32
  }
  func.func @transform_9(%arg0: i32) -> (i32, i32) {
    %c0_i32 = arith.constant 0 : i32
    %c0_i32_0 = arith.constant 0 : i32
    return %arg0, %c0_i32 : i32, i32
  }
}

</mosaic_0001>

<bundles_post_ra>
// kernel: tpu_custom_call.1
= control target key start
LH: loop header
LB: loop body
LE: loop exit
PB: predicated region body
PF: predicated region fallthrough
CT: control target
= control target key end

     0   :  { %v650_v3 = vmov 0.0|0.0   ;;  %vm651_vm0 = vmmov 0   ;;  %v652_v6 = vmov 0.0   ;;  %s786_s0 = inlined_call_operand.vmem [shape: f32[8,32], index: 0, kind: input, shape index: {}]   ;;  %s787_s1 = inlined_call_operand.vmem [shape: f32[32,16], index: 1, kind: input, shape index: {}]   ;;  %s788_s2 = inlined_call_operand.vmem [shape: f32[1,16], index: 2, kind: input, shape index: {}]   ;;  %s789_s3 = inlined_call_operand.vmem [shape: f32[16,16], index: 3, kind: input, shape index: {}]   ;;  %s790_s4 = inlined_call_operand.vmem [shape: f32[1,16], index: 4, kind: input, shape index: {}]   ;;  %s791_s5 = inlined_call_operand.vmem [shape: f32[16,32], index: 5, kind: input, shape index: {}]   ;;  %s792_s6 = inlined_call_operand.vmem [shape: f32[1,32], index: 6, kind: input, shape index: {}]   ;;  %s793_s7 = inlined_call_operand.vmem [shape: f32[32,4], index: 7, kind: input, shape index: {}]   ;;  %s794_s8 = inlined_call_operand.vmem [shape: f32[4,32], index: 8, kind: input, shape index: {}]   ;;  %s795_s9 = inlined_call_operand.hbm [shape: f32[8,32], index: 9, kind: output, shape index: {}]  }
   0x1   :  { %v34_v0 = vld [vmem:[%s787_s1] sm:$0xff]  ;;  %v35_v1 = vld [vmem:[%s787_s1 + $0x8] sm:$0xff]  ;;  %v36_v2 = vld [vmem:[%s787_s1 + $0x10] sm:$0xff]  ;;  %595 = vmatprep.subr.bf16.mxu0 %v650_v3  ;;  %562 = vmatprep.mubr.msk.f32.mxu0 %vm651_vm0, %v652_v6 }
   0x2   :  { %v596_v4 = vpack.c.bf16 %v35_v1, %v34_v0  ;;  %v37_v5 = vld [vmem:[%s787_s1 + $0x18] sm:$0xff]  ;;  %601 = vmatprep.subr.bf16.mxu1 %v650_v3  ;;  %569 = vmatprep.mubr.msk.f32.mxu1 %vm651_vm0, %v652_v6 }
   0x3   :  { %14 = vsyncpa [#allocation3], 0  ;;  %v599_v7 = vpack.c.bf16 %v37_v5, %v36_v2  ;;  %v33_v8 = vld [vmem:[%s786_s0] sm:$0xff]  ;;  %vm45_vm1 = vcmask 261120   ;;  %v121_v10 = vld [vmem:[%s789_s3 + $0x8] sm:$0xff]  ;;  %vm129_vm2 = vcmask 130048   ;;  %v293_v25 = vlaneseq }
   0x4   :  { %597 = vmatpush3.bf16.msra.mxu0 %v596_v4  ;;  %v120_v9 = vld [vmem:[%s789_s3] sm:$0xff]  ;;  %v205_v18 = vld [vmem:[%s791_s5 + $0x8] sm:$0xff]  ;;  %v653_v30 = vmov 0   ;;  %v288_v52 = vld [vmem:[%s793_s7 + $0x10] sm:$0xff]  ;;  %vm433_vm8 = vcmask 1043456   ;;  %vm429_vm9 = vcmask 31744  }
   0x5   :  { %598 = vmatprep.subr.bf16.mxu0 %v650_v3  ;;  %v602_v11 = vpack.c.bf16 %v121_v10, %v120_v9  ;;  %v527_v12 = vld [vmem:[%s788_s2] ss:$0 sm:$0xff]  ;;  %v294_v27 = vshrl.u32 %v293_v25, 7  ;;  %v287_v51 = vld [vmem:[%s793_s7 + $0x8] sm:$0xff]  ;;  %v289_v54 = vld [vmem:[%s793_s7 + $0x18] sm:$0xff] }
   0x6   :  { %v204_v17 = vld [vmem:[%s791_s5] sm:$0xff]  ;;  %v611_v55 = vpack.c.bf16 %v289_v54, %v288_v52 }
   0x7   :  { %603 = vmatpush3.bf16.msra.mxu1 %v602_v11  ;;  %v605_v19 = vpack.c.bf16 %v205_v18, %v204_v17  ;;  %v529_v20 = vld [vmem:[%s790_s4] ss:$0 sm:$0xff]  ;;  %v325_v28 = vsub.s32 2, %v294_v27  ;;  %v295_v29 = vsub.s32 0, %v294_v27  ;;  %v340_v32 = vsub.s32 3, %v294_v27 }
   0x8   :  { %600 = vmatpush3.bf16.msra.mxu0 %v599_v7  ;;  %604 = vmatprep.subr.bf16.mxu1 %v650_v3  ;;  %v290_v26 = vld [vmem:[%s794_s8] sm:$0xf]  ;;  %v310_v33 = vsub.s32 1, %v294_v27 }
   0x9   :  { %607 = vmatprep.subr.bf16.mxu0 %v650_v3  ;;  %vm291_vm3 = vcmp.gt.f32.partialorder %v290_v26, 0.5  ;;  %v531_v36 = vld [vmem:[%s792_s6] ss:$0 sm:$0xff]  ;;  %v305_v58 = vrot.slane %v290_v26, %v295_v29  ;;  %v335_v60 = vrot.slane %v290_v26, %v325_v28  ;;  %v350_v63 = vrot.slane %v290_v26, %v340_v32 }
   0xa   :  { %v292_v31 = vsel %vm291_vm3, 1, %v653_v30  ;;  %v286_v50 = vld [vmem:[%s793_s7] sm:$0xff]  ;;  %v320_v59 = vrot.slane %v290_v26, %v310_v33  ;;  %s654_s7 = smov [#allocation2]  }
   0xb   :  { %563 = vmatmul.mubr.msk.f32.vlgmr.msra.gmra.mrb[0].mxu0 %vm45_vm1, %v33_v8  ;;  %v326_v34 = vrot.slane %v292_v31, %v325_v28  ;;  %v296_v35 = vrot.slane %v292_v31, %v295_v29  ;;  %v341_v37 = vrot.slane %v292_v31, %v340_v32  ;;  %v311_v38 = vrot.slane %v292_v31, %v310_v33  ;;  %s519_s14 = sshll.u32 %s654_s7, 4  ;;  %s520_s14 = int_to_ptr.vmem [resolvable:$true] %s519_s14 }
   0xc   :  { %587 = vmatprep.mubr.msk.f32.mxu0 %vm651_vm0, %v652_v6  ;;  %v608_v53 = vpack.c.bf16 %v287_v51, %v286_v50  ;;  %s626_s15 = scalar_lea.vmem %s520_s14, 128  ;;  %p631_p1 = scmp.lt.s32.totalorder %s520_s14, %s520_s14 }
   0xd   :  { %vm327_vm4 = vcmp.eq.s32.totalorder %v326_v34, 1  ;;  %vm297_vm5 = vcmp.eq.s32.totalorder %v296_v35, 1  ;;  %vm342_vm6 = vcmp.eq.s32.totalorder %v341_v37, 1  ;;  %vm312_vm7 = vcmp.eq.s32.totalorder %v311_v38, 1  ;;  %p627_p0 = scmp.ne.s32.totalorder %s520_s14, %s626_s15  ;;  %p632_p2 = scmp.lt.s32.totalorder %s626_s15, %s626_s15 }
   0xe   :  { %609 = vmatpush3.bf16.msra.mxu0 %v608_v53 }
   0xf   :  { %610 = vmatprep.subr.bf16.mxu0 %v650_v3  ;;  %p633_p3 = por %p632_p2, %p631_p1 }
  0x11   :  { %p634_p4 = pnand %p633_p3, %p627_p0 }
  0x12   :  { %612 = vmatpush3.bf16.msra.mxu0 %v611_v55 }
  0xde   :  { %v115_v13 = vpop.f32.mrb[0].mxu0 }
  0xdf   :  { %v116_v14 = vadd.f32 %v527_v12, %v115_v13  ;;  %v564_v15 = vpop.f32.mrb[1].mxu0 }
  0xe1   :  { %618 = vtanh.f32 %v116_v14 }
  0xeb   :  { %v619_v16 = vpop.eup %618 }
  0xec   :  { %570 = vmatmul.mubr.msk.f32.vlgmr.msra.gmra.mrb[0].mxu1 %vm129_vm2, %v619_v16 }
  0xed   :  { %576 = vmatprep.mubr.msk.f32.mxu1 %vm651_vm0, %v652_v6  ;;  %606 = vmatpush3.bf16.msra.mxu1 %v605_v19 }
  0xee   :  { %590 = vmatprep.subr.mxu1 %v652_v6 }
 0x1bf   :  { %v199_v21 = vpop.f32.mrb[0].mxu1 }
 0x1c0   :  { %v200_v22 = vadd.f32 %v529_v20, %v199_v21  ;;  %v571_v23 = vpop.f32.mrb[1].mxu1 }
 0x1c2   :  { %620 = vtanh.f32 %v200_v22 }
 0x1cc   :  { %v621_v24 = vpop.eup %620 }
 0x1cd   :  { %577 = vmatmul.mubr.msk.f32.vlgmr.msra.gmra.mrb[2].mxu1 %vm129_vm2, %v621_v24 }
 0x1ce   :  { %592 = vmatprep.mubr.msk.f32.mxu1 %vm651_vm0, %v652_v6  ;;  %591 = vmatpush3.msk.msra.mxu1 %vm433_vm8, %v290_v26 }
 0x2a0   :  { %v282_v39 = vpop.f32.mrb[2].mxu1 }
 0x2a1   :  { %v283_v40 = vadd.f32 %v531_v36, %v282_v39  ;;  %v578_v41 = vpop.f32.mrb[3].mxu1 }
 0x2a3   :  { %v328_v42 = vsel %vm327_vm4, %v283_v40, -1e+30  ;;  %v298_v43 = vsel %vm297_vm5, %v283_v40, -1e+30  ;;  %v343_v46 = vsel %vm342_vm6, %v283_v40, -1e+30 }
 0x2a4   :  { %v329_v44 = vsel %vm45_vm1, %v328_v42, -inf  ;;  %v299_v45 = vsel %vm45_vm1, %v298_v43, -inf  ;;  %v313_v47 = vsel %vm312_vm7, %v283_v40, -1e+30  ;;  %v344_v48 = vsel %vm45_vm1, %v343_v46, -inf }
 0x2a5   :  { %330 = vmax.xlane.f32.xlu1 %v329_v44  ;;  %300 = vmax.xlane.f32.xlu0 %v299_v45  ;;  %v314_v49 = vsel %vm45_vm1, %v313_v47, -inf }
 0x2a9   :  { %345 = vmax.xlane.f32.xlu1 %v344_v48  ;;  %315 = vmax.xlane.f32.xlu0 %v314_v49 }
 0x332   :  { %v331_v56 = vpop.xlane.xlu1 %330  ;;  %v301_v57 = vpop.xlane.xlu0 %300 }
 0x333   :  { %v306_v62 = vmul.f32 %v305_v58, %v301_v57  ;;  %v336_v2 = vmul.f32 %v335_v60, %v331_v56 }
 0x336   :  { %v316_v61 = vpop.xlane.xlu0 %315  ;;  %v346_v1 = vpop.xlane.xlu1 %345 }
 0x337   :  { %v321_v0 = vmul.f32 %v320_v59, %v316_v61  ;;  %v351_v5 = vmul.f32 %v350_v63, %v346_v1 }
 0x339   :  { %v322_v4 = vadd.f32 %v321_v0, %v306_v62 }
 0x33b   :  { %v337_v6 = vadd.f32 %v336_v2, %v322_v4 }
 0x33d   :  { %v352_v7 = vadd.f32 %v351_v5, %v337_v6 }
 0x33f   :  { %v353_v8 = vsub.f32 %v283_v40, %v352_v7 }
 0x341   :  { %v354_v3 = vmul.f32 1.442695, %v353_v8 }
 0x343   :  { %622 = vpow2.f32 %v354_v3 }
 0x34d   :  { %v623_v9 = vpop.eup %622 }
 0x34e   :  { %588 = vmatmul.mubr.msk.f32.vlgmr.msra.gmra.mrb[2].mxu0 %vm45_vm1, %v623_v9 }
 0x421   :  { %v425_v10 = vpop.f32.mrb[2].mxu0 }
 0x422   :  { %v589_v11 = vpop.f32.mrb[3].mxu0  ;;  %593 = vmatmul.mubr.msk.f32.vlgmr.msra.gmra.mrb[4].mxu1 %vm429_vm9, %v425_v10 }
 0x4f5   :  { %v503_v12 = vpop.f32.mrb[4].mxu1 }
 0x4f6   :  { %624 = vrcp.f32 %v503_v12  ;;  %v594_v13 = vpop.f32.mrb[5].mxu1 }
 0x500   :  { %v625_v14 = vpop.eup %624 }
 0x501   :  { %v508_v15 = vmul.f32 %v625_v14, %v503_v12 }
 0x503   :  { %v509_v16 = vsub.f32 2.0, %v508_v15 }
 0x505   :  { %v510_v17 = vmul.f32 %v625_v14, %v509_v16 }
 0x507   :  { %v511_v18 = vmul.f32 %v623_v9, %v510_v17 }
 0x509   :  { %512 = vst.msk [vmem:[#allocation2] sm:$0xff] %vm45_vm1, %v511_v18 }
 0x50a   :  { %637 = shalt.err (!%p634_p4)
}
 0x50b   :  { %s638_s18 = scalar_lea.hbm %s795_s9, 128 }
 0x50c   :  { %p639_p5 = scmp.ne.s32.totalorder %s795_s9, %s638_s18  ;;  %p642_p6 = scmp.lt.u32.totalorder %s638_s18, %s795_s9 }
 0x50e   :  { %p644_p7 = pnand %p642_p6, %p639_p5 }
 0x510   :  { %647 = shalt.err (!%p644_p7)
}
 0x511   :  { %522 = dma.vmem_to_hbm [thread:$0]  %s520_s14, 128, %s795_s9, [#allocation3]  }
 0x512   :  { %648 = dma.done.wait [#allocation3], 128  }
 0x513   :  { %649 = vsyncadd [#allocation3], 4294967168 }
 0x514   :  { %526 = vsyncpa [#allocation3], 1 }

</bundles_post_ra>
